<compile_context>
chip_gen: v7x
topology: tpu7x:2x2x1
jax: 0.10.0
libtpu: 0.0.40
codegen_flags: <defaults>
</compile_context>

<pallas_src>
import jax
import jax.numpy as jnp
import numpy as np
from jax.experimental import pallas as pl
from jax.experimental.pallas import tpu as pltpu


def _round_up(a, m):
    return (a + m - 1) // m * m


def _make_temporal_block_kernel(K, dilation, P, P_pad, Lp, C_in_p, C_out_p, BT):
    """Kernel factory.

    Per grid step (one batch tile of BT elements) the kernel sees:
      xpad_ref : (BT, C_in_p, P_pad + Lp)  bf16, left replicate-padded input
      w1_ref   : (2*C_out_p, K*C_in_p)     bf16, conv1 taps flattened; rows
                                           [C_out_p:] are the fused residual
                                           (1x1) weights in the last tap block
      b1_ref   : (2*C_out_p, 1)            f32, [b1 ; bd]
      w2_ref   : (C_out_p, K*C_out_p)      bf16, conv2 taps flattened
      b2_ref   : (C_out_p, 1)              f32
      o_ref    : (BT, C_out_p, Lp)
    """
    off0 = P_pad - P  # first-tap lane offset inside each padded window

    def kernel(xpad_ref, w1_ref, b1_ref, w2_ref, b2_ref, o_ref):
        w1 = w1_ref[...]
        w2 = w2_ref[...]
        b1 = b1_ref[...]
        b2 = b2_ref[...]

        # One (C_in_p, P_pad+Lp) load per batch element; taps are value slices.
        xs = [xpad_ref[i] for i in range(BT)]

        # ---- conv1 + residual: ONE batch-folded MXU matmul ------------------
        # cols1[t*C_in_p + c, i*Lp + l] = x_pad[i, c, off0 + t*dilation + l]
        cols1 = jnp.concatenate(
            [jnp.concatenate(
                [xs[i][:, off0 + t * dilation: off0 + t * dilation + Lp]
                 for t in range(K)], axis=0)
             for i in range(BT)], axis=1)                     # (K*C_in_p, BT*Lp)
        y1 = jnp.dot(w1, cols1, preferred_element_type=jnp.float32) + b1
        h1 = jnp.maximum(y1[:C_out_p, :], 0.0)                # conv1->chomp->ReLU
        res = y1[C_out_p:, :]                                 # fused downsample(x)
        # dropout1: identity at inference time.

        h1b = h1.astype(jnp.bfloat16)

        # ---- conv2: lane-aligned left replicate pad of h1, then ONE matmul ---
        if P > 0:
            h1p = [jnp.concatenate(
                       [jnp.broadcast_to(h1b[:, i * Lp:i * Lp + 1],
                                         (C_out_p, P_pad)),
                        h1b[:, i * Lp:(i + 1) * Lp]], axis=1)  # (C_out_p, P_pad+Lp)
                   for i in range(BT)]
        else:
            h1p = [h1b[:, i * Lp:(i + 1) * Lp] for i in range(BT)]
        cols2 = jnp.concatenate(
            [jnp.concatenate(
                [h1p[i][:, off0 + t * dilation: off0 + t * dilation + Lp]
                 for t in range(K)], axis=0)
             for i in range(BT)], axis=1)                     # (K*C_out_p, BT*Lp)
        h2 = jnp.maximum(
            jnp.dot(w2, cols2, preferred_element_type=jnp.float32) + b2, 0.0)
        # dropout2: identity at inference time.

        out = jnp.maximum(h2 + res, 0.0).astype(o_ref.dtype)  # (C_out_p, BT*Lp)
        for i in range(BT):                                   # lane-aligned stores
            o_ref[i] = out[:, i * Lp:(i + 1) * Lp]

    return kernel


def temporal_block(x, params, *, kernel_size, dilation, padding, stride=1,
                   batch_tile=8, out_dtype=jnp.bfloat16,
                   vmem_limit_bytes=48 * 1024 * 1024):
    """x: (B, C_in, L) float32.  params: effective (post-weight-norm) conv
    weights in PyTorch layout: w1 (C_out, C_in, K), w2 (C_out, C_out, K),
    wd (C_out, C_in), biases (C_out,).

    out_dtype defaults to bf16 (output writeback dominates this low-intensity
    kernel); pass jnp.float32 for the module's original output dtype.
    vmem_limit_bytes=48 MiB is safe on v7x (64 MiB/TC); raise to ~96-112 MiB on
    v5e/v6e (128 MiB) together with a larger batch_tile if desired."""
    B, C_in, L = x.shape
    K, P, d = kernel_size, padding, dilation
    if stride != 1:
        raise NotImplementedError("TemporalBlock kernel assumes stride == 1")
    if P != (K - 1) * d:
        # Left-pad-only + fused-residual layout relies on the standard TCN
        # relation padding == (kernel_size - 1) * dilation (as used by the model).
        raise NotImplementedError("kernel requires padding == (kernel_size-1)*dilation")

    w1, w2, wd = params["w1"], params["w2"], params["wd"]
    C_out = w1.shape[0]

    # ---- tile-aligned sizes ----
    C_in_p = _round_up(C_in, 16)                  # bf16 sublane pack
    C_out_p = _round_up(C_out, 16)
    Lp = max(_round_up(L, 128), 128)              # lane-dense sequence length
    P_pad = _round_up(P, 128) if P > 0 else 0     # lane-dense left pad
    Wp = P_pad + Lp
    out_bytes = jnp.dtype(out_dtype).itemsize

    # ---- batch tile: VMEM budget + >= 2 grid steps (v7x has 2 TCs) ----
    per_b = (2 * C_in_p * Wp * 2                  # input block, double-buffered, bf16
             + 2 * C_out_p * Lp * out_bytes       # output block, double-buffered
             + K * (C_in_p + C_out_p) * Lp * 2    # cols1 + cols2 (bf16)
             + C_out_p * Wp * 2                   # padded h1 (bf16)
             + 4 * C_out_p * Lp * 4)              # y1 (h1+res) and h2/out in f32
    BT = max(1, min(batch_tile, B, (40 * 1024 * 1024) // max(per_b, 1)))
    if B >= 2:
        BT = min(BT, -(-B // 2))                  # at least two grid steps
    B_pad = _round_up(B, BT)

    # ---- lane-dense, left-replicate-padded input (single input stream) ----
    xpad = jnp.pad(x, ((0, 0), (0, 0), (P_pad, 0)), mode="edge")
    xpad = jnp.pad(xpad, ((0, B_pad - B), (0, C_in_p - C_in), (0, Lp - L)))
    xpad = xpad.astype(jnp.bfloat16)

    # ---- flatten taps into the contraction dim; fuse the residual into conv1 --
    # flat weight row t*C_p + c multiplies input tap t, channel c.
    w1_p = jnp.pad(w1, ((0, C_out_p - C_out), (0, C_in_p - C_in), (0, 0)))
    w1_flat = jnp.transpose(w1_p, (0, 2, 1)).reshape(C_out_p, K * C_in_p)
    wd_p = jnp.pad(wd, ((0, C_out_p - C_out), (0, C_in_p - C_in)))
    # xpad[:, :, P_pad:] is exactly the last-tap im2col block, so the 1x1
    # residual conv rides along as C_out_p extra output rows of the same matmul.
    wd_flat = jnp.concatenate(
        [jnp.zeros((C_out_p, (K - 1) * C_in_p), wd_p.dtype), wd_p], axis=1)
    w1_aug = jnp.concatenate([w1_flat, wd_flat], axis=0).astype(jnp.bfloat16)

    w2_p = jnp.pad(w2, ((0, C_out_p - C_out), (0, C_out_p - C_out), (0, 0)))
    w2_flat = jnp.transpose(w2_p, (0, 2, 1)).reshape(
        C_out_p, K * C_out_p).astype(jnp.bfloat16)

    b1_aug = jnp.concatenate(
        [jnp.pad(params["b1"], (0, C_out_p - C_out)),
         jnp.pad(params["bd"], (0, C_out_p - C_out))]
    ).reshape(2 * C_out_p, 1).astype(jnp.float32)
    b2_p = jnp.pad(params["b2"], (0, C_out_p - C_out)
                   ).reshape(C_out_p, 1).astype(jnp.float32)

    kernel = _make_temporal_block_kernel(K, d, P, P_pad, Lp, C_in_p, C_out_p, BT)

    out = pl.pallas_call(
        kernel,
        out_shape=jax.ShapeDtypeStruct((B_pad, C_out_p, Lp), out_dtype),
        grid=(B_pad // BT,),
        in_specs=[
            pl.BlockSpec((BT, C_in_p, Wp), lambda b: (b, 0, 0)),         # xpad
            pl.BlockSpec((2 * C_out_p, K * C_in_p), lambda b: (0, 0)),   # w1 | wd
            pl.BlockSpec((2 * C_out_p, 1), lambda b: (0, 0)),            # b1 ; bd
            pl.BlockSpec((C_out_p, K * C_out_p), lambda b: (0, 0)),      # w2
            pl.BlockSpec((C_out_p, 1), lambda b: (0, 0)),                # b2
        ],
        out_specs=pl.BlockSpec((BT, C_out_p, Lp), lambda b: (b, 0, 0)),
        compiler_params=pltpu.CompilerParams(
            dimension_semantics=("parallel",),
            vmem_limit_bytes=vmem_limit_bytes),
    )(xpad, w1_aug, b1_aug, w2_flat, b2_p)

    return out[:B, :C_out, :L]


# ------------------------- pure-JAX reference --------------------------------
def temporal_block_ref(x, params, *, kernel_size, dilation, padding,
                       matmul_dtype=jnp.float32):
    """Faithful reference: pad both sides (PyTorch replicate), conv, chomp.
    matmul_dtype lets us mirror the kernel's bf16-operand matmuls."""
    K, d, P = kernel_size, dilation, padding

    def conv1d_replicate(xx, w, b):
        xxp = jnp.pad(xx, ((0, 0), (0, 0), (P, P)), mode="edge")
        L = xx.shape[2]
        out = jnp.zeros((xx.shape[0], w.shape[0], L), jnp.float32)
        for t in range(K):
            out = out + jnp.einsum(
                "oc,bcl->bol",
                w[:, :, t].astype(matmul_dtype),
                xxp[:, :, t * d: t * d + L].astype(matmul_dtype),
                preferred_element_type=jnp.float32)
        return out + b[None, :, None]

    h1 = jax.nn.relu(conv1d_replicate(x, params["w1"], params["b1"]))
    h2 = jax.nn.relu(conv1d_replicate(h1, params["w2"], params["b2"]))
    res = jnp.einsum("oc,bcl->bol",
                     params["wd"].astype(matmul_dtype),
                     x.astype(matmul_dtype),
                     preferred_element_type=jnp.float32) + params["bd"][None, :, None]
    return jax.nn.relu(h2 + res)


# ------------------------- deterministic parameter setup ---------------------
def init_params(key, n_inputs, n_outputs, kernel_size):
    """Effective conv weights, emulating weight_norm: w = g * v / ||v||
    (norm over (in, k) per output channel)."""
    ks = jax.random.split(key, 8)

    def wn_weight(kv, kg, shape):
        v = 0.05 * jax.random.normal(kv, shape, jnp.float32)
        g = 0.5 + jax.random.uniform(kg, (shape[0],), jnp.float32)
        norm = jnp.sqrt(jnp.sum(v * v, axis=(1, 2), keepdims=True) + 1e-12)
        return g[:, None, None] * v / norm

    w1 = wn_weight(ks[0], ks[1], (n_outputs, n_inputs, kernel_size))
    w2 = wn_weight(ks[2], ks[3], (n_outputs, n_outputs, kernel_size))
    wd = 0.01 * jax.random.normal(ks[4], (n_outputs, n_inputs), jnp.float32)
    b1 = 0.1 * jax.random.normal(ks[5], (n_outputs,), jnp.float32)
    b2 = 0.1 * jax.random.normal(ks[6], (n_outputs,), jnp.float32)
    bd = 0.1 * jax.random.normal(ks[7], (n_outputs,), jnp.float32)
    return dict(w1=w1, b1=b1, w2=w2, b2=b2, wd=wd, bd=bd)


if __name__ == "__main__":
    # shapes consistent with the module forward: (Batch, input_channel, seq_len)
    B, n_inputs, n_outputs, L = 2, 4, 8, 16
    kernel_size, stride, dilation = 3, 1, 2
    padding = (kernel_size - 1) * dilation   # causal TCN convention

    key = jax.random.PRNGKey(0)
    kx, kp = jax.random.split(key)
    x = jax.random.normal(kx, (B, n_inputs, L), jnp.float32)
    params = init_params(kp, n_inputs, n_outputs, kernel_size)

    out = temporal_block(x, params, kernel_size=kernel_size,
                         dilation=dilation, padding=padding)
    out = jax.block_until_ready(out)
    out_f32 = np.asarray(out.astype(jnp.float32))

    # Check vs a reference that mirrors the kernel's bf16-operand / f32-accumulate
    # matmuls (only accumulation-order / bf16-rounding differences remain).
    ref_bf16 = temporal_block_ref(x, params, kernel_size=kernel_size,
                                  dilation=dilation, padding=padding,
                                  matmul_dtype=jnp.bfloat16)
    np.testing.assert_allclose(out_f32, np.asarray(ref_bf16),
                               rtol=2e-2, atol=2e-2)

    # Sanity check vs the full-f32 reference (looser: bf16 MXU operands + bf16 out).
    ref_f32 = temporal_block_ref(x, params, kernel_size=kernel_size,
                                 dilation=dilation, padding=padding,
                                 matmul_dtype=jnp.float32)
    np.testing.assert_allclose(out_f32, np.asarray(ref_f32),
                               rtol=5e-2, atol=5e-2)

    print("KERNEL_OK")
</pallas_src>

<mosaic_0001>
module attributes {stable_mosaic.version = 11 : i64} {
  func.func @kernel(%arg0: i32, %arg1: memref<1x16x256xbf16, #tpu.memory_space<vmem>>, %arg2: memref<32x48xbf16, #tpu.memory_space<vmem>>, %arg3: memref<32x1xf32, #tpu.memory_space<vmem>>, %arg4: memref<16x48xbf16, #tpu.memory_space<vmem>>, %arg5: memref<16x1xf32, #tpu.memory_space<vmem>>, %arg6: memref<1x16x128xbf16, #tpu.memory_space<vmem>>) attributes {dimension_semantics = [#tpu.dimension_semantics<parallel>], iteration_bounds = array<i64: 2>, scalar_prefetch = 0 : i64, scratch_operands = 0 : i64, tpu.core_type = #tpu.core_type<tc>, window_params = [{transform_indices = @transform_0, window_bounds = array<i64: 1, 16, 256>}, {pipeline_mode = #tpu.pipeline_mode<synchronous>, transform_indices = @transform_1, window_bounds = array<i64: 32, 48>}, {pipeline_mode = #tpu.pipeline_mode<synchronous>, transform_indices = @transform_2, window_bounds = array<i64: 32, 1>}, {pipeline_mode = #tpu.pipeline_mode<synchronous>, transform_indices = @transform_3, window_bounds = array<i64: 16, 48>}, {pipeline_mode = #tpu.pipeline_mode<synchronous>, transform_indices = @transform_4, window_bounds = array<i64: 16, 1>}, {transform_indices = @transform_5, window_bounds = array<i64: 1, 16, 128>}]} {
    %c0 = arith.constant 0 : index
    %c0_0 = arith.constant 0 : index
    %0 = vector.load %arg2[%c0, %c0_0] : memref<32x48xbf16, #tpu.memory_space<vmem>>, vector<32x48xbf16>
    %c0_1 = arith.constant 0 : index
    %c0_2 = arith.constant 0 : index
    %1 = vector.load %arg4[%c0_1, %c0_2] : memref<16x48xbf16, #tpu.memory_space<vmem>>, vector<16x48xbf16>
    %c0_3 = arith.constant 0 : index
    %c0_4 = arith.constant 0 : index
    %2 = vector.load %arg3[%c0_3, %c0_4] : memref<32x1xf32, #tpu.memory_space<vmem>>, vector<32x1xf32>
    %c0_5 = arith.constant 0 : index
    %c0_6 = arith.constant 0 : index
    %3 = vector.load %arg5[%c0_5, %c0_6] : memref<16x1xf32, #tpu.memory_space<vmem>>, vector<16x1xf32>
    %c0_7 = arith.constant 0 : index
    %c0_8 = arith.constant 0 : index
    %c0_9 = arith.constant 0 : index
    %4 = vector.load %arg1[%c0_7, %c0_8, %c0_9] : memref<1x16x256xbf16, #tpu.memory_space<vmem>>, vector<1x16x256xbf16>
    %5 = vector.shape_cast %4 : vector<1x16x256xbf16> to vector<16x256xbf16>
    %6 = vector.extract_strided_slice %5 {offsets = [0, 124], sizes = [16, 128], strides = [1, 1]} : vector<16x256xbf16> to vector<16x128xbf16>
    %7 = vector.extract_strided_slice %5 {offsets = [0, 126], sizes = [16, 128], strides = [1, 1]} : vector<16x256xbf16> to vector<16x128xbf16>
    %8 = vector.extract_strided_slice %5 {offsets = [0, 128], sizes = [16, 128], strides = [1, 1]} : vector<16x256xbf16> to vector<16x128xbf16>
    %9 = tpu.concatenate %6, %7, %8 in 0 : vector<16x128xbf16>, vector<16x128xbf16>, vector<16x128xbf16> -> vector<48x128xbf16>
    %cst = arith.constant dense<0.000000e+00> : vector<32x128xf32>
    %10 = tpu.matmul %0, %9, %cst {dimension_numbers = #tpu.dot_dimension_numbers<[1], [0], [0], [1], [0, 0, 1, 1], [], []>} : vector<32x48xbf16>, vector<48x128xbf16>, vector<32x128xf32> -> vector<32x128xf32>
    %11 = vector.broadcast %2 : vector<32x1xf32> to vector<32x128xf32>
    %12 = arith.addf %10, %11 : vector<32x128xf32>
    %13 = vector.extract_strided_slice %12 {offsets = [0, 0], sizes = [16, 128], strides = [1, 1]} : vector<32x128xf32> to vector<16x128xf32>
    %cst_10 = arith.constant 0.000000e+00 : f32
    %14 = vector.broadcast %cst_10 : f32 to vector<16x128xf32>
    %15 = arith.maximumf %13, %14 : vector<16x128xf32>
    %16 = vector.extract_strided_slice %12 {offsets = [16, 0], sizes = [16, 128], strides = [1, 1]} : vector<32x128xf32> to vector<16x128xf32>
    %17 = arith.truncf %15 : vector<16x128xf32> to vector<16x128xbf16>
    %18 = vector.extract_strided_slice %17 {offsets = [0, 0], sizes = [16, 1], strides = [1, 1]} : vector<16x128xbf16> to vector<16x1xbf16>
    %19 = vector.shape_cast %18 : vector<16x1xbf16> to vector<16x1xbf16>
    %20 = vector.broadcast %19 : vector<16x1xbf16> to vector<16x128xbf16>
    %21 = tpu.concatenate %20, %17 in 1 : vector<16x128xbf16>, vector<16x128xbf16> -> vector<16x256xbf16>
    %22 = vector.extract_strided_slice %21 {offsets = [0, 124], sizes = [16, 128], strides = [1, 1]} : vector<16x256xbf16> to vector<16x128xbf16>
    %23 = vector.extract_strided_slice %21 {offsets = [0, 126], sizes = [16, 128], strides = [1, 1]} : vector<16x256xbf16> to vector<16x128xbf16>
    %24 = vector.extract_strided_slice %21 {offsets = [0, 128], sizes = [16, 128], strides = [1, 1]} : vector<16x256xbf16> to vector<16x128xbf16>
    %25 = tpu.concatenate %22, %23, %24 in 0 : vector<16x128xbf16>, vector<16x128xbf16>, vector<16x128xbf16> -> vector<48x128xbf16>
    %cst_11 = arith.constant dense<0.000000e+00> : vector<16x128xf32>
    %26 = tpu.matmul %1, %25, %cst_11 {dimension_numbers = #tpu.dot_dimension_numbers<[1], [0], [0], [1], [0, 0, 1, 1], [], []>} : vector<16x48xbf16>, vector<48x128xbf16>, vector<16x128xf32> -> vector<16x128xf32>
    %27 = vector.broadcast %3 : vector<16x1xf32> to vector<16x128xf32>
    %28 = arith.addf %26, %27 : vector<16x128xf32>
    %cst_12 = arith.constant 0.000000e+00 : f32
    %29 = vector.broadcast %cst_12 : f32 to vector<16x128xf32>
    %30 = arith.maximumf %28, %29 : vector<16x128xf32>
    %31 = arith.addf %30, %16 : vector<16x128xf32>
    %cst_13 = arith.constant 0.000000e+00 : f32
    %32 = vector.broadcast %cst_13 : f32 to vector<16x128xf32>
    %33 = arith.maximumf %31, %32 : vector<16x128xf32>
    %34 = arith.truncf %33 : vector<16x128xf32> to vector<16x128xbf16>
    %c0_14 = arith.constant 0 : index
    %c0_15 = arith.constant 0 : index
    %c0_16 = arith.constant 0 : index
    %35 = vector.load %arg6[%c0_14, %c0_15, %c0_16] : memref<1x16x128xbf16, #tpu.memory_space<vmem>>, vector<1x16x128xbf16>
    %36 = vector.shape_cast %35 : vector<1x16x128xbf16> to vector<16x128xbf16>
    %37 = vector.shape_cast %34 : vector<16x128xbf16> to vector<1x16x128xbf16>
    tpu.vector_store %arg6[%c0_14, %c0_15, %c0_16], %37 {strides = array<i32>} : memref<1x16x128xbf16, #tpu.memory_space<vmem>>, vector<1x16x128xbf16>,
    return
  }
  func.func @transform_0(%arg0: i32) -> (i32, i32, i32) {
    %c0_i32 = arith.constant 0 : i32
    %c0_i32_0 = arith.constant 0 : i32
    %c0_i32_1 = arith.constant 0 : i32
    return %arg0, %c0_i32, %c0_i32_0 : i32, i32, i32
  }
  func.func @transform_1(%arg0: i32) -> (i32, i32) {
    %c0_i32 = arith.constant 0 : i32
    %c0_i32_0 = arith.constant 0 : i32
    %c0_i32_1 = arith.constant 0 : i32
    return %c0_i32, %c0_i32_0 : i32, i32
  }
  func.func @transform_2(%arg0: i32) -> (i32, i32) {
    %c0_i32 = arith.constant 0 : i32
    %c0_i32_0 = arith.constant 0 : i32
    %c0_i32_1 = arith.constant 0 : i32
    return %c0_i32, %c0_i32_0 : i32, i32
  }
  func.func @transform_3(%arg0: i32) -> (i32, i32) {
    %c0_i32 = arith.constant 0 : i32
    %c0_i32_0 = arith.constant 0 : i32
    %c0_i32_1 = arith.constant 0 : i32
    return %c0_i32, %c0_i32_0 : i32, i32
  }
  func.func @transform_4(%arg0: i32) -> (i32, i32) {
    %c0_i32 = arith.constant 0 : i32
    %c0_i32_0 = arith.constant 0 : i32
    %c0_i32_1 = arith.constant 0 : i32
    return %c0_i32, %c0_i32_0 : i32, i32
  }
  func.func @transform_5(%arg0: i32) -> (i32, i32, i32) {
    %c0_i32 = arith.constant 0 : i32
    %c0_i32_0 = arith.constant 0 : i32
    %c0_i32_1 = arith.constant 0 : i32
    return %arg0, %c0_i32, %c0_i32_0 : i32, i32, i32
  }
}

</mosaic_0001>

<bundles_post_ra>
// kernel: tpu_custom_call.1
= control target key start
LH: loop header
LB: loop body
LE: loop exit
PB: predicated region body
PF: predicated region fallthrough
CT: control target
= control target key end

     0   :  { %10 = vsyncpa [#allocation3], 0  ;;  %s910_s0 = inlined_call_operand.vmem [shape: bf16[2,16,256], index: 0, kind: input, shape index: {}]   ;;  %s911_s1 = inlined_call_operand.vmem [shape: bf16[32,48], index: 1, kind: input, shape index: {}]   ;;  %s912_s2 = inlined_call_operand.vmem [shape: f32[32,1], index: 2, kind: input, shape index: {}]   ;;  %s913_s3 = inlined_call_operand.vmem [shape: bf16[16,48], index: 3, kind: input, shape index: {}]   ;;  %s914_s4 = inlined_call_operand.vmem [shape: f32[16,1], index: 4, kind: input, shape index: {}]   ;;  %s915_s5 = inlined_call_operand.hbm [shape: bf16[2,16,128], index: 5, kind: output, shape index: {}]  }
   0x1   :  { %12 = vsyncpa [#allocation3 + $0x1], 0  ;;  %s754_s18 = smov 0   ;;  %s756_s19 = smov 0  }
   0x2   :  { %s758_s20 = smov 0   ;;  %s760_s21 = smov 0  }
   0x3 LB: > { %s775_s22 = sadd.s32 4294967295, %s714_s21   ;;  %s538_s23 = sadd.s32 4294967294, %s714_s21   ;;  %s714_s21 = sphi %s760_s21, %s921_s21   ;;  %s710_s20 = sphi %s758_s20, %s920_s20   ;;  %s706_s19 = sphi %s756_s19, %s919_s19   ;;  %s702_s18 = sphi %s754_s18, %s918_s18  }
   0x4   : > { %s779_s24 = sadd.s32 1, %s714_s21   ;;  %s135_s25 = sadd.s32 1, %s710_s20 }
   0x5   : > { %s132_s26 = ssub.s32 %s714_s21, %s779_s24  ;;  %p145_p0 = scmp.ne.s32.totalorder %s710_s20, %s706_s19 }
   0x6   : > { %p133_p1 = scmp.eq.s32.totalorder %s132_s26, 0  ;;  %p146_p2 = scmp.eq.s32.totalorder %s775_s22, 1 }
   0x7   : > { %p151_p3 = scmp.ne.s32.totalorder %s706_s19, %s702_s18  ;;  %p152_p4 = scmp.eq.s32.totalorder %s538_s23, 1 }
   0x8   : > { %s790_s27 = scalar_select %p133_p1, %s710_s20, %s135_s25  }
   0x9   : > { %p792_p5 = por %p146_p2, %p145_p0  ;;  %p796_p6 = por %p152_p4, %p151_p3 }
   0xa   : > { %p541_p7 = scmp.ge.s32.totalorder %s714_s21, 1  ;;  %p190_p8 = scmp.lt.s32.totalorder %s714_s21, 3 }
   0xc   : > { %p191_p9 = pnand %p541_p7, %p190_p8 }
   0xd   : > { %p218_p10 = scmp.lt.s32.totalorder (!%p191_p9), %s775_s22, 1  ;;  %s716_s10 = smov (!%p191_p9), 126   ;;  %v649_v2 = vld [vmem:[%s911_s1] sm:$0xff] (!%p191_p9)   ;;  %vm300_vm0 = vcmask (!%p191_p9), 392192   ;;  %vm250_vm1 = vcmask (!%p191_p9), 1031168   ;;  %v719_v5 = vmov (!%p191_p9), 0  }
   0xe   : > { %194 = sbr.rel (%p191_p9) target bundleno = 1097 (0x449), region = 40  ;;  %s717_s11 = smov (!%p191_p9), 124   ;;  %584 = vmatprep.mubr.msk.bf16.mxu0 (!%p191_p9), %vm300_vm0, %v649_v2  ;;  %644 = vset.pattern.permute.xlu0 (!%p191_p9), %v719_v5  ;;  %vm294_vm2 = vcmask (!%p191_p9), 31744   ;;  %v230_v9 = vld [vmem:[%s912_s2] sm:$0xff] (!%p191_p9)  ;;  %v231_v12 = vld [vmem:[%s912_s2 + $0x8] sm:$0xff] (!%p191_p9)  ;;  %v720_v29 = vmov (!%p191_p9), 0.0  }
   0xf   : > { %s718_s12 = smov (!%p191_p9), 4   ;;  %645 = vset.pattern.permute.xlu1 (!%p191_p9), %v719_v5  ;;  %v650_v17 = vld [vmem:[%s911_s1 + $0x8] sm:$0xff] (!%p191_p9)   ;;  %588 = vmatprep.subr.bf16.mxu1 (!%p191_p9), %v720_v29  ;;  %v234_v32 = vld [vmem:[%s914_s4] sm:$0xff] (!%p191_p9)  ;;  %v232_v33 = vld [vmem:[%s912_s2 + $0x10] sm:$0xff] (!%p191_p9)  ;;  %vm721_vm3 = vmmov (!%p191_p9), 0   ;;  %s215_s16 = sand.u32 (!%p191_p9), 1, %s706_s19  }
  0x10   : > { %594 = vmatprep.mubr.msk.bf16.mxu1 (!%p191_p9), %vm721_vm3, %v720_v29  ;;  %v235_v37 = vld [vmem:[%s914_s4 + $0x8] sm:$0xff] (!%p191_p9)  ;;  %v233_v41 = vld [vmem:[%s912_s2 + $0x18] sm:$0xff] (!%p191_p9)  ;;  %v651_v46 = vld [vmem:[%s913_s3] sm:$0xff] (!%p191_p9)   ;;  %s542_s17 = sshll.u32 (!%p191_p9), %s215_s16, 3  ;;  %s563_s23 = sshll.u32 (!%p191_p9), %s775_s22, 7 }
  0x11   : > { %s217_s25 = scalar_lea.vmem (!%p191_p9), [#allocation2], %s542_s17  ;;  %s864_s7 = scalar_lea.hbm (!%p191_p9), %s915_s5, %s563_s23 }
  0x12   : > { %s476_s26 = sshll.u32 (!%p191_p9), %s217_s25, 4  ;;  %s868_s8 = scalar_lea.sflag (!%p191_p9), [#allocation3], %s215_s16  ;;  %s866_s26 = int_to_ptr.vmem [resolvable:$true] %s476_s26 }
  0x15   : > { %s219_s30 = scalar_select %p218_p10, %s775_s22, 1 }
  0x16   : > { %s722_s22 = smov [#allocation2]  }
  0x17   : > { %s560_s6 = sshll.u32 %s219_s30, 4 }
  0x18   : > { %s222_s9 = scalar_lea.vmem %s910_s0, %s560_s6 }
  0x19   : > { %v646_v0 = vld [vmem:[%s222_s9] ss:$8 sps:$4 sm:$0xff]   ;;  %v648_v1 = vld [vmem:[%s222_s9 + $0x4] ss:$8 sps:$4 sm:$0xff]   ;;  %s652_s9 = scalar_lea.vmem %s866_s26, 128 }
  0x1a   : > { %246 = vrot.lane.b32.xlu0 %v646_v0, %s716_s10  ;;  %252 = vrot.lane.b32.xlu1 %v648_v1, %s717_s11  ;;  %p653_p11 = scmp.ne.s32.totalorder %s866_s26, %s652_s9 }
  0x1c   : > { %p654_p12 = pnand %p653_p11, %p792_p5 }
  0x1e   : > { %248 = vrot.lane.b32.xlu0 %v648_v1, %s716_s10  ;;  %284 = vrot.lane.b32.xlu1 %v646_v0, %s718_s12  ;;  %p655_p13 = pneg %p654_p12 }
  0x22   : > { %286 = vrot.lane.b32.xlu0 %v648_v1, %s718_s12 }
  0x8c   : > { %v247_v3 = vpop.permute.xlu0 %246  ;;  %v253_v4 = vpop.permute.xlu1 %252 }
  0x90   : > { %v249_v6 = vpop.permute.xlu0 %248  ;;  %v285_v8 = vpop.permute.xlu1 %284 }
  0x91   : > { %290 = vrot.lane.b32.xlu0 %v249_v6, %s718_s12  ;;  %v251_v7 = vsel %vm250_vm1, %v247_v3, %v249_v6 }
  0x92   : > { %288 = vrot.lane.b32.xlu1 %v251_v7, %s718_s12 }
  0x94   : > { %v287_v10 = vpop.permute.xlu0 %286 }
  0x95   : > { %v295_v11 = vsel %vm294_vm2, %v285_v8, %v287_v10  ;;  %256 = vperm.xlu0 %644, %v230_v9  }
  0x96   : > { %292 = vrot.lane.b32.xlu1 %v253_v4, %s718_s12  ;;  %578 = vmatprep.subr.bf16.mxu0 %v295_v11 }
  0x97   : > { %579 = vmatpush3.bf16.msra.mxu0 %v295_v11 }
  0x9a   : > { %261 = vperm.xlu1 %645, %v231_v12  }
 0x103   : > { %v291_v13 = vpop.permute.xlu0 %290 }
 0x104   : > { %v289_v14 = vpop.permute.xlu1 %288 }
 0x105   : > { %v296_v15 = vsel %vm294_vm2, %v289_v14, %v291_v13 }
 0x106   : > { %580 = vmatprep.subr.bf16.mxu0 %v296_v15 }
 0x107   : > { %581 = vmatpush3.bf16.msra.mxu0 %v296_v15 }
 0x108   : > { %v293_v16 = vpop.permute.xlu1 %292 }
 0x109   : > { %582 = vmatprep.subr.bf16.mxu0 %v293_v16 }
 0x10b   : > { %583 = vmatpush3.bf16.msra.mxu0 %v293_v16 }
 0x10e   : > { %585 = vmatmul.mubr.msk.bf16.vlgmr.msra.gmra.mrb[0].mxu0 %vm300_vm0, %v650_v17 }
 0x114   : > { %v257_v18 = vpop.permute.xlu0 %256 }
 0x119   : > { %v262_v21 = vpop.permute.xlu1 %261 }
 0x1e1   : > { %v586_v19 = vpop.f32.mrb[0].mxu0 }
 0x1e2   : > { %v341_v20 = vpop.f32.mrb[1].mxu0 }
 0x1e3   : > { %v342_v22 = vadd.f32 %v341_v20, %v257_v18  ;;  %v587_v23 = vpop.f32.mrb[2].mxu0 }
 0x1e4   : > { %v344_v24 = vpop.f32.mrb[3].mxu0 }
 0x1e5   : > { %v345_v25 = vadd.f32 %v344_v24, %v262_v21  ;;  %v356_v26 = vmax.f32 %v342_v22, 0.0 }
 0x1e7   : > { %v357_v27 = vmax.f32 %v345_v25, 0.0 }
 0x1e9   : > { %v358_v28 = vpack.c.bf16 %v357_v27, %v356_v26 }
 0x1eb   : > { %361 = vperm.xlu1 %645, %v358_v28  }
 0x1ef   : > { %367 = vrot.lane.b32.xlu1 %v358_v28, %s716_s10 }
 0x26a   : > { %v362_v30 = vpop.permute.xlu1 %361 }
 0x26b   : > { %387 = vrot.lane.b32.xlu1 %v362_v30, %s718_s12  ;;  %365 = vrot.lane.b32.xlu0 %v362_v30, %s716_s10  ;;  %s656_s10 = sshll.u32 %s722_s22, 4  ;;  %s657_s10 = int_to_ptr.vmem [resolvable:$false] %s656_s10 }
 0x26c   : > { %p659_p0 = scmp.lt.s32.totalorder %s866_s26, %s657_s10 }
 0x26e   : > { %v368_v31 = vpop.permute.xlu1 %367 }
 0x26f   : > { %370 = vrot.lane.b32.xlu0 %v358_v28, %s717_s11  ;;  %s658_s11 = scalar_lea.vmem %s657_s10, 256 }
 0x270   : > { %p660_p1 = scmp.lt.s32.totalorder %s658_s11, %s652_s9 }
 0x272   : > { %p661_p2 = por %p660_p1, %p659_p0 }
 0x273   : > { %389 = vrot.lane.b32.xlu0 %v358_v28, %s718_s12 }
 0x274   : > { %p662_p3 = pnand %p661_p2, %p655_p13 }
 0x277   : > { %393 = vrot.lane.b32.xlu0 %v368_v31, %s718_s12 }
 0x27b   : > { %374 = vperm.xlu0 %644, %v234_v32  }
 0x27f   : > { %266 = vperm.xlu0 %644, %v232_v33  }
 0x2dd   : > { %v366_v34 = vpop.permute.xlu0 %365  ;;  %v388_v38 = vpop.permute.xlu1 %387 }
 0x2de   : > { %v369_v35 = vsel %vm250_vm1, %v366_v34, %v368_v31 }
 0x2df   : > { %391 = vrot.lane.b32.xlu1 %v369_v35, %s718_s12 }
 0x2e1   : > { %v371_v36 = vpop.permute.xlu0 %370 }
 0x2e3   : > { %395 = vrot.lane.b32.xlu1 %v371_v36, %s718_s12 }
 0x2e5   : > { %v390_v39 = vpop.permute.xlu0 %389 }
 0x2e6   : > { %v397_v40 = vsel %vm294_vm2, %v388_v38, %v390_v39 }
 0x2e7   : > { %379 = vperm.xlu1 %645, %v235_v37   ;;  %589 = vmatpush3.bf16.msra.mxu1 %v397_v40 }
 0x2e8   : > { %590 = vmatprep.subr.bf16.mxu1 %v720_v29 }
 0x2e9   : > { %v394_v42 = vpop.permute.xlu0 %393 }
 0x2eb   : > { %271 = vperm.xlu1 %645, %v233_v41  }
 0x2fa   : > { %v375_v47 = vpop.permute.xlu0 %374 }
 0x2fe   : > { %v267_v49 = vpop.permute.xlu0 %266 }
 0x2ff   : > { %v350_v55 = vadd.f32 %v586_v19, %v267_v49 }
 0x351   : > { %v392_v43 = vpop.permute.xlu1 %391 }
 0x352   : > { %v398_v44 = vsel %vm294_vm2, %v392_v43, %v394_v42 }
 0x353   : > { %591 = vmatpush3.bf16.msra.mxu1 %v398_v44 }
 0x354   : > { %592 = vmatprep.subr.bf16.mxu1 %v720_v29 }
 0x355   : > { %v396_v45 = vpop.permute.xlu1 %395 }
 0x357   : > { %593 = vmatpush3.bf16.msra.mxu1 %v396_v45 }
 0x35a   : > { %595 = vmatmul.mubr.msk.bf16.vlgmr.msra.gmra.mrb[0].mxu1 %vm300_vm0, %v651_v46 }
 0x366   : > { %v380_v48 = vpop.permute.xlu1 %379 }
 0x36a   : > { %v272_v53 = vpop.permute.xlu1 %271 }
 0x36b   : > { %v353_v59 = vadd.f32 %v587_v23, %v272_v53 }
 0x42d   : > { %v439_v50 = vpop.f32.mrb[0].mxu1 }
 0x42e   : > { %v440_v51 = vadd.f32 %v439_v50, %v375_v47  ;;  %v596_v52 = vpop.f32.mrb[1].mxu1 }
 0x42f   : > { %v442_v54 = vpop.f32.mrb[2].mxu1 }
 0x430   : > { %v446_v56 = vmax.f32 %v440_v51, 0.0  ;;  %v443_v57 = vadd.f32 %v442_v54, %v380_v48  ;;  %v597_v58 = vpop.f32.mrb[3].mxu1 }
 0x432   : > { %v448_v60 = vadd.f32 %v446_v56, %v350_v55  ;;  %v447_v61 = vmax.f32 %v443_v57, 0.0 }
 0x434   : > { %v449_v62 = vadd.f32 %v447_v61, %v353_v59  ;;  %v450_v63 = vmax.f32 %v448_v60, 0.0 }
 0x436   : > { %v451_v0 = vmax.f32 %v449_v62, 0.0 }
 0x438   : > { %v567_v1 = vpack.c.bf16 %v451_v0, %v450_v63 }
 0x43a   : > { %568 = vst [vmem:[%s217_s25] sm:$0xff] %v567_v1  }
 0x43b   : > { %665 = shalt.err (!%p662_p3)
}
 0x43c   : > { %s666_s13 = scalar_lea.hbm %s864_s7, 128  ;;  %s670_s16 = scalar_lea.hbm %s915_s5, 256 }
 0x43d   : > { %p667_p4 = scmp.ne.s32.totalorder %s864_s7, %s666_s13  ;;  %p671_p9 = scmp.lt.u32.totalorder %s864_s7, %s915_s5 }
 0x43e   : > { %p672_p10 = scmp.lt.u32.totalorder %s670_s16, %s666_s13  ;;  %p674_p12 = scmp.lt.u32.totalorder %s666_s13, %s864_s7 }
 0x43f   : > { %p668_p7 = pnand %p667_p4, %p792_p5 }
 0x440   : > { %p673_p11 = por %p672_p10, %p671_p9 }
 0x441   : > { %p669_p8 = pneg %p668_p7 }
 0x442   : > { %p675_p13 = por %p674_p12, %p673_p11 }
 0x444   : > { %p676_p0 = pnand %p675_p13, %p669_p8 }
 0x446   : > { %679 = shalt.err (!%p676_p0)
}
 0x447   : > { %s723_s25 = smov 64  }
 0x448   : > { %598 = dma.vmem_to_hbm [thread:$0]  (%p792_p5), %s866_s26, 128, %s864_s7, %s868_s8, %s723_s25, %s723_s25, %s718_s12  }
 0x449 PF: > { %p604_p1 = scmp.ge.s32.totalorder %s714_s21, 2  ;;  %s491_s30 = sand.u32 1, %s702_s18  }
 0x44a   : > { %s492_s6 = scalar_lea.sflag [#allocation3], %s491_s30 }
 0x44b   : > { %p601_p2 = pnand %p604_p1, %p796_p6 }
 0x44d   : > { %697 = dma.done.wait (!%p601_p2), %s492_s6, 128  }
 0x44e   : > { %699 = vsyncadd (!%p601_p2), %s492_s6, 4294967168  ;;  %p15_p3 = scmp.ge.s32.totalorder %s779_s24, 4   ;;  %s918_s18 = smov %s706_s19 }
 0x44f   : > { %s919_s19 = smov %s710_s20  ;;  %s920_s20 = smov %s790_s27 }
 0x450   : > { %s921_s21 = smov %s779_s24  ;;  %17 = sbr.rel (!%p15_p3) target bundleno = 3 (0x3), region = 75 }
 0x457   :  { %497 = vsyncpa [#allocation3], 1 }
 0x458   :  { %499 = vsyncpa [#allocation3 + $0x1], 1 }

</bundles_post_ra>
